<compile_context>
chip_gen: v6e
topology: v6e:2x2x1
jax: 0.10.0
libtpu: 0.0.40
codegen_flags: <defaults>
</compile_context>

<pallas_src>
import jax
import jax.numpy as jnp
from jax.experimental import pallas as pl
from jax.experimental.pallas import tpu as pltpu


# ----------------------------------------------------------------------------
# Pallas kernel: whole MLP forward (skip + relu ... + linear + sigmoid)
# ----------------------------------------------------------------------------
def _make_mlp_kernel(n_skip):
    """Kernel for `n_skip` skip_connection+ReLU blocks then Linear(., 2) + sigmoid.

    All refs hold *transposed* data: x_ref is (F, TB), each weight is in the raw
    torch layout (out, in), biases are (out, 1) columns, o_ref is (2, TB)."""

    def kernel(*refs):
        x_ref = refs[0]
        o_ref = refs[-1]
        p_refs = refs[1:-1]  # alternating (w, b) pairs, n_skip + 1 of them

        # Activations live in f32 for the element-wise path; matmul inputs are bf16.
        h = x_ref[...].astype(jnp.float32)                     # (F, TB)

        # skip_connection blocks: h = relu(h + W_sn @ h + b)
        for i in range(n_skip):
            w = p_refs[2 * i][...]                             # (F, F)  bf16
            b = p_refs[2 * i + 1][...]                         # (F, 1)  f32
            y = jnp.dot(w, h.astype(jnp.bfloat16),             # MXU, f32 accumulate
                        preferred_element_type=jnp.float32)
            h = jnp.maximum(h + y + b, 0.0)                    # VPU, f32

        # final Linear(size, 2) + sigmoid
        wf = p_refs[2 * n_skip][...]                           # (2, F)  bf16
        bf = p_refs[2 * n_skip + 1][...]                       # (2, 1)  f32
        logits = jnp.dot(wf, h.astype(jnp.bfloat16),
                         preferred_element_type=jnp.float32) + bf
        # sigmoid via EUP exp + approximate EUP reciprocal (no VPU f32 divide)
        o_ref[...] = pl.reciprocal(1.0 + jnp.exp(-logits), approx=True)

    return kernel


def mlp_forward(x, params, *, block_batch=2048):
    """Forward pass of the MLP.

    x:       [B, F_in] float32
    params:  list of (w [out, in] bf16, b [out, 1] f32); all but the last entry are
             (spectral-normalized) skip-connection layers, the last is Linear(F, 2).
    returns: [B, 2] float32 sigmoid probabilities.
    """
    B, f_in = x.shape
    n_skip = len(params) - 1
    out_dim = params[-1][0].shape[0]

    # ---- batch tiling ------------------------------------------------------
    tb = min(block_batch, B)
    if tb >= 128:
        tb = (tb // 128) * 128                 # keep the lane axis 128-aligned
    b_pad = pl.cdiv(B, tb) * tb
    grid = (b_pad // tb,)

    # transpose to [features, batch] so batch maps to lanes; stream x as bf16
    x_t = jnp.transpose(x).astype(jnp.bfloat16)
    if b_pad != B:
        x_t = jnp.pad(x_t, ((0, 0), (0, b_pad - B)))

    flat_params = []
    in_specs = [pl.BlockSpec((f_in, tb), lambda i: (0, i))]
    for w, b in params:
        flat_params += [w, b]
        # tiny weights/biases: whole array resident, constant block index => no re-DMA
        in_specs.append(pl.BlockSpec(w.shape, lambda i: (0, 0)))
        in_specs.append(pl.BlockSpec(b.shape, lambda i: (0, 0)))

    out_specs = pl.BlockSpec((out_dim, tb), lambda i: (0, i))

    # advisory cost estimate for the XLA scheduler
    flops = sum(2 * b_pad * w.shape[0] * w.shape[1] for w, _ in params)
    bytes_accessed = int(
        x_t.size * x_t.dtype.itemsize
        + b_pad * out_dim * 4
        + sum(w.size * w.dtype.itemsize + b.size * b.dtype.itemsize for w, b in params)
    )
    cost = pl.CostEstimate(
        flops=int(flops),
        transcendentals=int(2 * b_pad * out_dim),
        bytes_accessed=bytes_accessed,
    )

    out_t = pl.pallas_call(
        _make_mlp_kernel(n_skip),
        out_shape=jax.ShapeDtypeStruct((out_dim, b_pad), jnp.float32),
        grid=grid,
        in_specs=in_specs,
        out_specs=out_specs,
        compiler_params=pltpu.CompilerParams(
            dimension_semantics=("parallel",),   # megacore sharding on v7x
        ),
        cost_estimate=cost,
    )(x_t, *flat_params)

    return jnp.transpose(out_t[:, :B])


# ----------------------------------------------------------------------------
# Parameter construction (deterministic, mimics the PyTorch module's shapes)
# ----------------------------------------------------------------------------
def _spectral_normalize(w, n_iter=30):
    """w: [out, in] f32 -> w / sigma_max(w) via power iteration
    (what torch.nn.utils.spectral_norm applies to the weight)."""
    out_dim, _ = w.shape
    u = jnp.ones((out_dim,), jnp.float32) / jnp.sqrt(out_dim)

    def body(_, u):
        v = w.T @ u
        v = v / (jnp.linalg.norm(v) + 1e-12)
        u = w @ v
        u = u / (jnp.linalg.norm(u) + 1e-12)
        return u

    u = jax.lax.fori_loop(0, n_iter, body, u)
    v = w.T @ u
    v = v / (jnp.linalg.norm(v) + 1e-12)
    sigma = u @ (w @ v)
    return w / sigma


def init_mlp_params(key, dim_size):
    """Returns list of (w [out, in] bf16, b [out, 1] f32) — spectral norm applied to
    all skip-connection layers, plain init for the final Linear(size, 2)."""
    params = []
    for i, size in enumerate(dim_size):
        if i + 1 == len(dim_size):
            in_dim, out_dim, use_sn = size, 2, False
        else:
            in_dim, out_dim, use_sn = size, dim_size[i + 1], True
            # NB: skip_connection requires in_dim == out_dim for x + layer(x)
            assert in_dim == out_dim, "skip_connection needs equal in/out dims"

        key, kw, kb = jax.random.split(key, 3)
        bound = 1.0 / jnp.sqrt(in_dim)
        w = jax.random.uniform(kw, (out_dim, in_dim), jnp.float32, -bound, bound)
        b = jax.random.uniform(kb, (out_dim,), jnp.float32, -bound, bound)
        if use_sn:
            w = _spectral_normalize(w)

        params.append((w.astype(jnp.bfloat16), b.reshape(out_dim, 1)))
    return params


# ----------------------------------------------------------------------------
# Reference (pure JAX, mimics the kernel's bf16-matmul / f32-elementwise math)
# ----------------------------------------------------------------------------
def mlp_reference(x, params):
    h = x.astype(jnp.bfloat16).astype(jnp.float32)
    for w, b in params[:-1]:
        y = jnp.dot(h.astype(jnp.bfloat16), w.T, preferred_element_type=jnp.float32)
        h = jnp.maximum(h + y + b[:, 0], 0.0)
    wf, bf = params[-1]
    logits = jnp.dot(h.astype(jnp.bfloat16), wf.T,
                     preferred_element_type=jnp.float32) + bf[:, 0]
    return jax.nn.sigmoid(logits)


if __name__ == "__main__":
    dim_size = [32, 32, 32]   # two skip_connection+ReLU blocks, then Linear(32, 2)
    batch = 1024

    key = jax.random.PRNGKey(0)
    key, kx = jax.random.split(key)
    x = jax.random.normal(kx, (batch, dim_size[0]), jnp.float32)

    params = init_mlp_params(key, dim_size)

    out = mlp_forward(x, params, block_batch=256)   # grid of 4 pipelined batch tiles
    out = jax.block_until_ready(out)

    ref = mlp_reference(x, params)
    assert out.shape == (batch, 2)
    assert jnp.allclose(out, ref, atol=5e-3, rtol=1e-3), "mismatch vs reference"

    print("KERNEL_OK")
</pallas_src>

<mosaic_0001>
module attributes {stable_mosaic.version = 11 : i64} {
  func.func @kernel(%arg0: i32, %arg1: memref<32x256xbf16, #tpu.memory_space<vmem>>, %arg2: memref<32x32xbf16, #tpu.memory_space<vmem>>, %arg3: memref<32x1xf32, #tpu.memory_space<vmem>>, %arg4: memref<32x32xbf16, #tpu.memory_space<vmem>>, %arg5: memref<32x1xf32, #tpu.memory_space<vmem>>, %arg6: memref<2x32xbf16, #tpu.memory_space<vmem>>, %arg7: memref<2x1xf32, #tpu.memory_space<vmem>>, %arg8: memref<2x256xf32, #tpu.memory_space<vmem>>) attributes {dimension_semantics = [#tpu.dimension_semantics<parallel>], iteration_bounds = array<i64: 4>, scalar_prefetch = 0 : i64, scratch_operands = 0 : i64, tpu.core_type = #tpu.core_type<tc>, window_params = [{transform_indices = @transform_0, window_bounds = array<i64: 32, 256>}, {pipeline_mode = #tpu.pipeline_mode<synchronous>, transform_indices = @transform_1, window_bounds = array<i64: 32, 32>}, {pipeline_mode = #tpu.pipeline_mode<synchronous>, transform_indices = @transform_2, window_bounds = array<i64: 32, 1>}, {pipeline_mode = #tpu.pipeline_mode<synchronous>, transform_indices = @transform_3, window_bounds = array<i64: 32, 32>}, {pipeline_mode = #tpu.pipeline_mode<synchronous>, transform_indices = @transform_4, window_bounds = array<i64: 32, 1>}, {pipeline_mode = #tpu.pipeline_mode<synchronous>, transform_indices = @transform_5, window_bounds = array<i64: 2, 32>}, {pipeline_mode = #tpu.pipeline_mode<synchronous>, transform_indices = @transform_6, window_bounds = array<i64: 2, 1>}, {transform_indices = @transform_7, window_bounds = array<i64: 2, 256>}]} {
    %c0 = arith.constant 0 : index
    %c0_0 = arith.constant 0 : index
    %0 = vector.load %arg1[%c0, %c0_0] : memref<32x256xbf16, #tpu.memory_space<vmem>>, vector<32x256xbf16>
    %1 = arith.extf %0 : vector<32x256xbf16> to vector<32x256xf32>
    %c0_1 = arith.constant 0 : index
    %c0_2 = arith.constant 0 : index
    %2 = vector.load %arg2[%c0_1, %c0_2] : memref<32x32xbf16, #tpu.memory_space<vmem>>, vector<32x32xbf16>
    %c0_3 = arith.constant 0 : index
    %c0_4 = arith.constant 0 : index
    %3 = vector.load %arg3[%c0_3, %c0_4] : memref<32x1xf32, #tpu.memory_space<vmem>>, vector<32x1xf32>
    %4 = arith.truncf %1 : vector<32x256xf32> to vector<32x256xbf16>
    %cst = arith.constant dense<0.000000e+00> : vector<32x256xf32>
    %5 = tpu.matmul %2, %4, %cst {dimension_numbers = #tpu.dot_dimension_numbers<[1], [0], [0], [1], [0, 0, 1, 1], [], []>} : vector<32x32xbf16>, vector<32x256xbf16>, vector<32x256xf32> -> vector<32x256xf32>
    %6 = arith.addf %1, %5 : vector<32x256xf32>
    %7 = vector.broadcast %3 : vector<32x1xf32> to vector<32x256xf32>
    %8 = arith.addf %6, %7 : vector<32x256xf32>
    %cst_5 = arith.constant 0.000000e+00 : f32
    %9 = vector.broadcast %cst_5 : f32 to vector<32x256xf32>
    %10 = arith.maximumf %8, %9 : vector<32x256xf32>
    %c0_6 = arith.constant 0 : index
    %c0_7 = arith.constant 0 : index
    %11 = vector.load %arg4[%c0_6, %c0_7] : memref<32x32xbf16, #tpu.memory_space<vmem>>, vector<32x32xbf16>
    %c0_8 = arith.constant 0 : index
    %c0_9 = arith.constant 0 : index
    %12 = vector.load %arg5[%c0_8, %c0_9] : memref<32x1xf32, #tpu.memory_space<vmem>>, vector<32x1xf32>
    %13 = arith.truncf %10 : vector<32x256xf32> to vector<32x256xbf16>
    %cst_10 = arith.constant dense<0.000000e+00> : vector<32x256xf32>
    %14 = tpu.matmul %11, %13, %cst_10 {dimension_numbers = #tpu.dot_dimension_numbers<[1], [0], [0], [1], [0, 0, 1, 1], [], []>} : vector<32x32xbf16>, vector<32x256xbf16>, vector<32x256xf32> -> vector<32x256xf32>
    %15 = arith.addf %10, %14 : vector<32x256xf32>
    %16 = vector.broadcast %12 : vector<32x1xf32> to vector<32x256xf32>
    %17 = arith.addf %15, %16 : vector<32x256xf32>
    %cst_11 = arith.constant 0.000000e+00 : f32
    %18 = vector.broadcast %cst_11 : f32 to vector<32x256xf32>
    %19 = arith.maximumf %17, %18 : vector<32x256xf32>
    %c0_12 = arith.constant 0 : index
    %c0_13 = arith.constant 0 : index
    %20 = vector.load %arg6[%c0_12, %c0_13] : memref<2x32xbf16, #tpu.memory_space<vmem>>, vector<2x32xbf16>
    %c0_14 = arith.constant 0 : index
    %c0_15 = arith.constant 0 : index
    %21 = vector.load %arg7[%c0_14, %c0_15] : memref<2x1xf32, #tpu.memory_space<vmem>>, vector<2x1xf32>
    %22 = arith.truncf %19 : vector<32x256xf32> to vector<32x256xbf16>
    %cst_16 = arith.constant dense<0.000000e+00> : vector<2x256xf32>
    %23 = tpu.matmul %20, %22, %cst_16 {dimension_numbers = #tpu.dot_dimension_numbers<[1], [0], [0], [1], [0, 0, 1, 1], [], []>} : vector<2x32xbf16>, vector<32x256xbf16>, vector<2x256xf32> -> vector<2x256xf32>
    %24 = vector.broadcast %21 : vector<2x1xf32> to vector<2x256xf32>
    %25 = arith.addf %23, %24 : vector<2x256xf32>
    %cst_17 = arith.constant 0.000000e+00 : f32
    %26 = vector.broadcast %cst_17 : f32 to vector<2x256xf32>
    %27 = arith.subf %26, %25 : vector<2x256xf32>
    %28 = math.exp %27 : vector<2x256xf32>
    %cst_18 = arith.constant 1.000000e+00 : f32
    %29 = vector.broadcast %cst_18 : f32 to vector<2x256xf32>
    %30 = arith.addf %29, %28 : vector<2x256xf32>
    %31 = tpu.reciprocal %30 {approx = true} : vector<2x256xf32> -> vector<2x256xf32>
    %c0_19 = arith.constant 0 : index
    %c0_20 = arith.constant 0 : index
    %32 = vector.load %arg8[%c0_19, %c0_20] : memref<2x256xf32, #tpu.memory_space<vmem>>, vector<2x256xf32>
    tpu.vector_store %arg8[%c0_19, %c0_20], %31 {strides = array<i32>} : memref<2x256xf32, #tpu.memory_space<vmem>>, vector<2x256xf32>,
    return
  }
  func.func @transform_0(%arg0: i32) -> (i32, i32) {
    %c0_i32 = arith.constant 0 : i32
    %c0_i32_0 = arith.constant 0 : i32
    return %c0_i32, %arg0 : i32, i32
  }
  func.func @transform_1(%arg0: i32) -> (i32, i32) {
    %c0_i32 = arith.constant 0 : i32
    %c0_i32_0 = arith.constant 0 : i32
    %c0_i32_1 = arith.constant 0 : i32
    return %c0_i32, %c0_i32_0 : i32, i32
  }
  func.func @transform_2(%arg0: i32) -> (i32, i32) {
    %c0_i32 = arith.constant 0 : i32
    %c0_i32_0 = arith.constant 0 : i32
    %c0_i32_1 = arith.constant 0 : i32
    return %c0_i32, %c0_i32_0 : i32, i32
  }
  func.func @transform_3(%arg0: i32) -> (i32, i32) {
    %c0_i32 = arith.constant 0 : i32
    %c0_i32_0 = arith.constant 0 : i32
    %c0_i32_1 = arith.constant 0 : i32
    return %c0_i32, %c0_i32_0 : i32, i32
  }
  func.func @transform_4(%arg0: i32) -> (i32, i32) {
    %c0_i32 = arith.constant 0 : i32
    %c0_i32_0 = arith.constant 0 : i32
    %c0_i32_1 = arith.constant 0 : i32
    return %c0_i32, %c0_i32_0 : i32, i32
  }
  func.func @transform_5(%arg0: i32) -> (i32, i32) {
    %c0_i32 = arith.constant 0 : i32
    %c0_i32_0 = arith.constant 0 : i32
    %c0_i32_1 = arith.constant 0 : i32
    return %c0_i32, %c0_i32_0 : i32, i32
  }
  func.func @transform_6(%arg0: i32) -> (i32, i32) {
    %c0_i32 = arith.constant 0 : i32
    %c0_i32_0 = arith.constant 0 : i32
    %c0_i32_1 = arith.constant 0 : i32
    return %c0_i32, %c0_i32_0 : i32, i32
  }
  func.func @transform_7(%arg0: i32) -> (i32, i32) {
    %c0_i32 = arith.constant 0 : i32
    %c0_i32_0 = arith.constant 0 : i32
    return %c0_i32, %arg0 : i32, i32
  }
}

</mosaic_0001>

<bundles_post_ra>
// kernel: tpu_custom_call.1
= control target key start
LH: loop header
LB: loop body
LE: loop exit
PB: predicated region body
PF: predicated region fallthrough
CT: control target
= control target key end

     0   :  { %12 = vsyncpa [#allocation3], 0  ;;  %s1186_s0 = inlined_call_operand.hbm [shape: bf16[32,1024], index: 0, kind: input, shape index: {}]   ;;  %s1187_s1 = inlined_call_operand.vmem [shape: bf16[32,32], index: 1, kind: input, shape index: {}]   ;;  %s1188_s2 = inlined_call_operand.vmem [shape: f32[32,1], index: 2, kind: input, shape index: {}]   ;;  %s1189_s3 = inlined_call_operand.vmem [shape: bf16[32,32], index: 3, kind: input, shape index: {}]   ;;  %s1190_s4 = inlined_call_operand.vmem [shape: f32[32,1], index: 4, kind: input, shape index: {}]   ;;  %s1191_s5 = inlined_call_operand.vmem [shape: bf16[2,32], index: 5, kind: input, shape index: {}]   ;;  %s1192_s6 = inlined_call_operand.vmem [shape: f32[2,1], index: 6, kind: input, shape index: {}]   ;;  %s1193_s7 = inlined_call_operand.hbm [shape: f32[2,1024], index: 7, kind: output, shape index: {}]  }
   0x1   :  { %14 = vsyncpa [#allocation3 + $0x1], 0 }
   0x2   :  { %15 = vsyncpa [#allocation4], 0 }
   0x3   :  { %17 = vsyncpa [#allocation4 + $0x1], 0  ;;  %s979_s24 = smov 0   ;;  %s981_s25 = smov 0  }
   0x4   :  { %s983_s26 = smov 0   ;;  %s985_s27 = smov 0  }
   0x5 LB: > { %s1000_s28 = sadd.s32 4294967295, %s931_s27   ;;  %s741_s29 = sadd.s32 4294967294, %s931_s27   ;;  %s931_s27 = sphi %s985_s27, %s1208_s27   ;;  %s927_s26 = sphi %s983_s26, %s1207_s26   ;;  %s923_s25 = sphi %s981_s25, %s1206_s25   ;;  %s919_s24 = sphi %s979_s24, %s1205_s24  }
   0x6   : > { %s1004_s30 = sadd.s32 1, %s931_s27   ;;  %s30_s8 = sadd.s32 1, %s927_s26 }
   0x7   : > { %s27_s9 = ssub.s32 %s931_s27, %s1004_s30  ;;  %p37_p0 = scmp.ne.s32.totalorder %s927_s26, %s923_s25 }
   0x8   : > { %p28_p1 = scmp.eq.s32.totalorder %s27_s9, 0  ;;  %p38_p2 = scmp.eq.s32.totalorder %s931_s27, 0 }
   0x9   : > { %p43_p3 = scmp.ne.s32.totalorder %s923_s25, %s919_s24  ;;  %p44_p4 = scmp.eq.s32.totalorder %s1000_s28, 0 }
   0xa   : > { %s1016_s10 = scalar_select %p28_p1, %s927_s26, %s30_s8  }
   0xb   : > { %p1018_p5 = por %p38_p2, %p37_p0  ;;  %p1022_p6 = por %p44_p4, %p43_p3 }
   0xc   : > { %p193_p7 = scmp.eq.s32.totalorder %s1000_s28, 3  ;;  %p199_p8 = scmp.eq.s32.totalorder %s741_s29, 3 }
   0xd   : > { %s1197_s12 = scalar_select %p1022_p6, 1, 0 }
   0xe   : > { %p783_p9 = scmp.lt.s32.totalorder %s931_s27, 4  ;;  %p1028_p10 = por %p193_p7, %p37_p0 }
   0xf   : > { %p1032_p11 = por %p199_p8, %p43_p3  ;;  %s237_s15 = sand.u32 1, %s927_s26  }
  0x10   : > { %s1198_s13 = scalar_select %p1028_p10, 1, 0 }
  0x11   : > { %s1199_s14 = scalar_select %p1032_p11, 1, 0 }
  0x12   : > { %s769_s16 = sshll.u32 %s931_s27, 7  ;;  %s744_s17 = sshll.u32 %s237_s15, 5 }
  0x13   : > { %s1041_s20 = scalar_lea.hbm %s1186_s0, %s769_s16  ;;  %s241_s21 = scalar_lea.vmem [#allocation2], %s744_s17 }
  0x14   : > { %s248_s22 = sshll.u32 %s241_s21, 4  ;;  %p1045_p12 = pnand %p783_p9, %p1018_p5  ;;  %s1049_s22 = int_to_ptr.vmem [resolvable:$true] %s248_s22 }
  0x15   : > { %s1052_s29 = scalar_lea.sflag [#allocation3], %s237_s15  ;;  %s839_s8 = scalar_lea.hbm %s1041_s20, 512 }
  0x16   : > { %p840_p0 = scmp.ne.s32.totalorder %s1041_s20, %s839_s8  ;;  %p841_p1 = pneg %p1045_p12 }
  0x17   : > { %s844_s11 = scalar_lea.hbm %s1186_s0, 2048  ;;  %p845_p4 = scmp.lt.s32.totalorder %s1041_s20, %s1186_s0 }
  0x18   : > { %p842_p2 = pnand %p841_p1, %p840_p0  ;;  %p846_p5 = scmp.lt.s32.totalorder %s844_s11, %s839_s8 }
  0x1a   : > { %p843_p3 = pneg %p842_p2  ;;  %p847_p7 = por %p846_p5, %p845_p4 }
  0x1c   : > { %p848_p8 = pnand %p847_p7, %p843_p3 }
  0x1e   : > { %851 = shalt.err (!%p848_p8)
}
  0x1f   : > { %s852_s15 = scalar_lea.vmem %s1049_s22, 512  ;;  %s933_s19 = smov [#allocation2]  }
  0x20   : > { %p853_p9 = scmp.ne.s32.totalorder %s1049_s22, %s852_s15  ;;  %s857_s21 = sshll.u32 %s933_s19, 4  ;;  %s858_s21 = int_to_ptr.vmem [resolvable:$false] %s857_s21 }
  0x21   : > { %s859_s9 = scalar_lea.vmem %s858_s21, 1024  ;;  %p860_p2 = scmp.lt.s32.totalorder %s1049_s22, %s858_s21 }
  0x22   : > { %p855_p13 = pnand %p853_p9, %p841_p1  ;;  %p861_p11 = scmp.lt.s32.totalorder %s859_s9, %s852_s15 }
  0x24   : > { %p856_p0 = pneg %p855_p13  ;;  %p862_p10 = por %p861_p11, %p860_p2 }
  0x26   : > { %p863_p6 = pnand %p862_p10, %p856_p0 }
  0x28   : > { %866 = shalt.err (!%p863_p6)
}
  0x29   : > { %s934_s8 = smov 512   ;;  %s935_s16 = smov 128  }
  0x2a   : > { %s936_s11 = smov 8   ;;  %p256_p13 = scmp.lt.s32.totalorder %s931_s27, 5 }
  0x2b   : > { %778 = dma.hbm_to_vmem [thread:$0]  (!%p1045_p12), %s1041_s20, 512, %s1049_s22, %s1052_s29, %s934_s8, %s935_s16, %s936_s11  }
  0x2c   : > { %p1201_p1 = scmp.ge.s32.totalorder %s931_s27, 1 }
  0x2e   : > { %p257_p3 = pnand %p1201_p1, %p256_p13 }
  0x2f   : > { %s1077_s17 = sand.u32 (!%p257_p3), 1, %s923_s25   ;;  %p1202_p6 = scmp.ne.s32.totalorder (!%p257_p3), %s1197_s12, 0 }
  0x30   : > { %260 = sbr.rel (%p257_p3) target bundleno = 757 (0x2f5), region = 48  ;;  %s748_s18 = sshll.u32 (!%p257_p3), %s1077_s17, 5 }
  0x31   : > { %s263_s15 = scalar_lea.sflag (!%p257_p3), [#allocation3], %s1077_s17  ;;  %s266_s19 = scalar_lea.vmem (!%p257_p3), [#allocation2], %s748_s18 }
  0x35   : > { %910 = dma.done.wait (%p1202_p6), %s263_s15, 512  }
  0x36   : > { %912 = vsyncadd (%p1202_p6), %s263_s15, 4294966784  ;;  %v937_v0 = vmov 0   ;;  %v302_v1 = vld [vmem:[%s266_s19 + $0x10] sm:$0xff]  ;;  %v1089_v2 = vld [vmem:[%s266_s19 + $0x18] sm:$0xff]  ;;  %vm350_vm0 = vcmask 261120   ;;  %s749_s22 = sshll.u32 %s1077_s17, 2 }
  0x37   : > { %389 = vmatprep.mubr.bf16.mxu0 %v937_v0  ;;  %821 = vset.pattern.permute.xlu0 %v937_v0  ;;  %v1091_v3 = vld [vmem:[%s266_s19] sm:$0xff]  ;;  %v755_v4 = vcombine.high %v302_v1, %v1089_v2  ;;  %v754_v5 = vcombine.low %v302_v1, %v1089_v2  ;;  %v301_v6 = vld [vmem:[%s266_s19 + $0x8] sm:$0xff]  ;;  %v318_v8 = vld [vmem:[%s1188_s2 + $0x10] sm:$0xff]  ;;  %v309_v26 = vunpack.c.h.bf16 %v302_v1  ;;  %v308_v28 = vunpack.c.l.bf16 %v302_v1  ;;  %s770_s23 = sshll.u32 %s1000_s28, 6  ;;  %s296_s29 = scalar_lea.vmem [#allocation5], %s749_s22 }
  0x38   : > { %822 = vset.pattern.permute.xlu1 %v937_v0  ;;  %514 = vmatprep.mubr.bf16.mxu1 %v937_v0  ;;  %v753_v7 = vcombine.high %v1091_v3, %v301_v6  ;;  %v752_v9 = vcombine.low %v1091_v3, %v301_v6  ;;  %v316_v10 = vld [vmem:[%s1188_s2] sm:$0xff]  ;;  %v319_v11 = vld [vmem:[%s1188_s2 + $0x18] sm:$0xff]  ;;  %v317_v12 = vld [vmem:[%s1188_s2 + $0x8] sm:$0xff]  ;;  %v307_v25 = vunpack.c.h.bf16 %v301_v6  ;;  %v305_v30 = vunpack.c.h.bf16 %v1091_v3  ;;  %s671_s21 = sshll.u32 %s296_s29, 4  ;;  %s669_s16 = scalar_lea.hbm %s1193_s7, %s770_s23  ;;  %s672_s21 = int_to_ptr.vmem [resolvable:$true] %s671_s21 }
  0x39   : > { %369 = vmatprep.subr.bf16.mxu0 %v755_v4  ;;  %430 = vperm.xlu0 %821, %v318_v8   ;;  %v827_v13 = vld [vmem:[%s1187_s1] sm:$0xff]   ;;  %v460_v14 = vld [vmem:[%s1190_s4 + $0x10] sm:$0xff]  ;;  %v461_v15 = vld [vmem:[%s1190_s4 + $0x18] sm:$0xff]  ;;  %v310_v31 = vunpack.c.l.bf16 %v1089_v2  ;;  %v306_v32 = vunpack.c.l.bf16 %v301_v6  ;;  %v311_v36 = vunpack.c.h.bf16 %v1089_v2  ;;  %v304_v37 = vunpack.c.l.bf16 %v1091_v3  ;;  %s657_s11 = scalar_lea.sflag [#allocation4], %s1077_s17  ;;  %s867_s18 = scalar_lea.vmem %s672_s21, 64 }
  0x3a   : > { %370 = vmatpush1.bf16.msra.mxu0 %v754_v5  ;;  %420 = vperm.xlu1 %822, %v316_v10   ;;  %v458_v16 = vld [vmem:[%s1190_s4] sm:$0xff]  ;;  %v459_v17 = vld [vmem:[%s1190_s4 + $0x8] sm:$0xff]  ;;  %p868_p10 = scmp.ne.s32.totalorder %s672_s21, %s867_s18  ;;  %p1203_p11 = scmp.ne.s32.totalorder %s1198_s13, 0 }
  0x3b   : > { %371 = vmatprep.subr.bf16.mxu0 %v753_v7  ;;  %v828_v18 = vld [vmem:[%s1187_s1 + $0x8] sm:$0xff]   ;;  %v580_v19 = vld [vmem:[%s1192_s6] sm:$0x3]  ;;  %s938_s15 = smov [#allocation5]  }
  0x3c   : > { %v829_v5 = vld [vmem:[%s1189_s3] sm:$0xff]   ;;  %v830_v6 = vld [vmem:[%s1189_s3 + $0x8] sm:$0xff]   ;;  %p869_p12 = pnand %p868_p10, %p1203_p11  ;;  %s871_s19 = sshll.u32 %s938_s15, 4  ;;  %s872_s19 = int_to_ptr.vmem [resolvable:$false] %s871_s19 }
  0x3d   : > { %435 = vperm.xlu0 %821, %v319_v11   ;;  %s873_s28 = scalar_lea.vmem %s872_s19, 128  ;;  %p874_p5 = scmp.lt.s32.totalorder %s672_s21, %s872_s19 }
  0x3e   : > { %372 = vmatpush1.bf16.msra.mxu0 %v752_v9  ;;  %425 = vperm.xlu1 %822, %v317_v12   ;;  %p870_p4 = pneg %p869_p12  ;;  %p875_p7 = scmp.lt.s32.totalorder %s873_s28, %s867_s18 }
  0x40   : > { %p876_p8 = por %p875_p7, %p874_p5 }
  0x41   : > { %756 = vmatmul.mubr.msk.bf16.vlgmr.msra.gmra.mxu0 %vm350_vm0, %v827_v13  ;;  %555 = vperm.xlu0 %821, %v460_v14  }
  0x42   : > { %399 = vmatprep.mubr.bf16.mxu0 %v937_v0  ;;  %560 = vperm.xlu1 %822, %v461_v15   ;;  %p877_p9 = pnand %p876_p8, %p870_p4 }
  0x45   : > { %545 = vperm.xlu0 %821, %v458_v16  }
  0x46   : > { %550 = vperm.xlu1 %822, %v459_v17  }
  0x49   : > { %757 = vmatmul.mubr.msk.bf16.gmra.mxu0 %vm350_vm0, %v828_v18  ;;  %587 = vperm.xlu0 %821, %v580_v19  }
  0x4a   : > { %625 = vmatprep.mubr.bf16.mxu0 %v937_v0 }
  0xb4   : > { %v431_v24 = vpop.permute.xlu0 %430 }
  0xb5   : > { %v421_v27 = vpop.permute.xlu1 %420 }
  0xb8   : > { %v436_v40 = vpop.permute.xlu0 %435 }
  0xb9   : > { %v426_v44 = vpop.permute.xlu1 %425 }
  0xbc   : > { %v556_v13 = vpop.permute.xlu0 %555 }
  0xbd   : > { %v561_v11 = vpop.permute.xlu1 %560 }
 0x101   : > { %v391_v20 = vpop.f32.mrf.mxu0 }
 0x102   : > { %v410_v50 = vadd.f32 %v391_v20, %v304_v37  ;;  %v551_v20 = vpop.permute.xlu1 %550 }
 0x103   : > { %v393_v21 = vpop.f32.mrf.mxu0 }
 0x104   : > { %v411_v41 = vadd.f32 %v393_v21, %v305_v30  ;;  %v438_v59 = vadd.f32 %v421_v27, %v410_v50 }
 0x105   : > { %v395_v22 = vpop.f32.mrf.mxu0 }
 0x106   : > { %v412_v43 = vadd.f32 %v395_v22, %v306_v32  ;;  %v439_v52 = vadd.f32 %v421_v27, %v411_v41  ;;  %v446_v3 = vmax.f32 %v438_v59, 0.0  ;;  %v546_v27 = vpop.permute.xlu0 %545 }
 0x107   : > { %v397_v23 = vpop.f32.mrf.mxu0 }
 0x108   : > { %v413_v34 = vadd.f32 %v397_v23, %v307_v25  ;;  %v440_v54 = vadd.f32 %v426_v44, %v412_v43  ;;  %v447_v61 = vmax.f32 %v439_v52, 0.0 }
 0x109   : > { %v401_v29 = vpop.f32.mrf.mxu0 }
 0x10a   : > { %v414_v38 = vadd.f32 %v401_v29, %v308_v28  ;;  %v441_v46 = vadd.f32 %v426_v44, %v413_v34  ;;  %v448_v63 = vmax.f32 %v440_v54, 0.0 }
 0x10b   : > { %v403_v33 = vpop.f32.mrf.mxu0 }
 0x10c   : > { %v415_v35 = vadd.f32 %v403_v33, %v309_v26  ;;  %v442_v51 = vadd.f32 %v431_v24, %v414_v38  ;;  %v449_v56 = vmax.f32 %v441_v46, 0.0  ;;  %v462_v4 = vpack.c.bf16 %v448_v63, %v446_v3  ;;  %v579_v46 = vld [vmem:[%s1191_s5] sm:$0x1] }
 0x10d   : > { %v405_v39 = vpop.f32.mrf.mxu0 }
 0x10e   : > { %v416_v42 = vadd.f32 %v405_v39, %v310_v31  ;;  %v443_v49 = vadd.f32 %v431_v24, %v415_v35  ;;  %v450_v60 = vmax.f32 %v442_v51, 0.0  ;;  %v463_v2 = vpack.c.bf16 %v449_v56, %v447_v61 }
 0x10f   : > { %v407_v45 = vpop.f32.mrf.mxu0 }
 0x110   : > { %v444_v47 = vadd.f32 %v436_v40, %v416_v42  ;;  %v417_v48 = vadd.f32 %v407_v45, %v311_v36  ;;  %v451_v57 = vmax.f32 %v443_v49, 0.0 }
 0x112   : > { %v445_v53 = vadd.f32 %v436_v40, %v417_v48  ;;  %v452_v55 = vmax.f32 %v444_v47, 0.0  ;;  %v588_v47 = vpop.permute.xlu0 %587 }
 0x114   : > { %v453_v58 = vmax.f32 %v445_v53, 0.0  ;;  %v464_v1 = vpack.c.bf16 %v452_v55, %v450_v60 }
 0x116   : > { %v465_v62 = vpack.c.bf16 %v453_v58, %v451_v57 }
 0x118   : > { %494 = vmatprep.subr.bf16.mxu1 %v465_v62 }
 0x119   : > { %495 = vmatpush1.bf16.msra.mxu1 %v464_v1 }
 0x11a   : > { %496 = vmatprep.subr.bf16.mxu1 %v463_v2 }
 0x11d   : > { %497 = vmatpush1.bf16.msra.mxu1 %v462_v4 }
 0x120   : > { %760 = vmatmul.mubr.msk.bf16.vlgmr.msra.gmra.mxu1 %vm350_vm0, %v829_v5 }
 0x121   : > { %524 = vmatprep.mubr.bf16.mxu1 %v937_v0 }
 0x128   : > { %761 = vmatmul.mubr.msk.bf16.gmra.mxu1 %vm350_vm0, %v830_v6 }
 0x1e0   : > { %v516_v7 = vpop.f32.mrf.mxu1 }
 0x1e1   : > { %v535_v28 = vadd.f32 %v516_v7, %v446_v3 }
 0x1e2   : > { %v518_v8 = vpop.f32.mrf.mxu1 }
 0x1e3   : > { %v536_v19 = vadd.f32 %v518_v8, %v447_v61  ;;  %v563_v37 = vadd.f32 %v546_v27, %v535_v28 }
 0x1e4   : > { %v520_v9 = vpop.f32.mrf.mxu1 }
 0x1e5   : > { %v537_v21 = vadd.f32 %v520_v9, %v448_v63  ;;  %v564_v30 = vadd.f32 %v546_v27, %v536_v19  ;;  %v571_v44 = vmax.f32 %v563_v37, 0.0 }
 0x1e6   : > { %v522_v10 = vpop.f32.mrf.mxu1 }
 0x1e7   : > { %v538_v15 = vadd.f32 %v522_v10, %v449_v56  ;;  %v565_v32 = vadd.f32 %v551_v20, %v537_v21  ;;  %v572_v39 = vmax.f32 %v564_v30, 0.0 }
 0x1e8   : > { %v526_v12 = vpop.f32.mrf.mxu1 }
 0x1e9   : > { %v539_v17 = vadd.f32 %v526_v12, %v450_v60  ;;  %v566_v23 = vadd.f32 %v551_v20, %v538_v15  ;;  %v573_v41 = vmax.f32 %v565_v32, 0.0 }
 0x1ea   : > { %v528_v14 = vpop.f32.mrf.mxu1 }
 0x1eb   : > { %v540_v16 = vadd.f32 %v528_v14, %v451_v57  ;;  %v567_v29 = vadd.f32 %v556_v13, %v539_v17  ;;  %v574_v34 = vmax.f32 %v566_v23, 0.0  ;;  %v581_v45 = vpack.c.bf16 %v573_v41, %v571_v44 }
 0x1ec   : > { %v530_v18 = vpop.f32.mrf.mxu1 }
 0x1ed   : > { %v541_v0 = vadd.f32 %v530_v18, %v452_v55  ;;  %v568_v24 = vadd.f32 %v556_v13, %v540_v16  ;;  %v575_v38 = vmax.f32 %v567_v29, 0.0  ;;  %v582_v43 = vpack.c.bf16 %v574_v34, %v572_v39 }
 0x1ee   : > { %v532_v22 = vpop.f32.mrf.mxu1 }
 0x1ef   : > { %v569_v25 = vadd.f32 %v561_v11, %v541_v0  ;;  %v542_v26 = vadd.f32 %v532_v22, %v453_v58  ;;  %v576_v35 = vmax.f32 %v568_v24, 0.0 }
 0x1f1   : > { %v570_v31 = vadd.f32 %v561_v11, %v542_v26  ;;  %v577_v33 = vmax.f32 %v569_v25, 0.0 }
 0x1f3   : > { %v578_v36 = vmax.f32 %v570_v31, 0.0  ;;  %v583_v42 = vpack.c.bf16 %v577_v33, %v575_v38 }
 0x1f5   : > { %v584_v40 = vpack.c.bf16 %v578_v36, %v576_v35 }
 0x1f7   : > { %605 = vmatprep.subr.bf16.mxu0 %v584_v40 }
 0x1f8   : > { %606 = vmatpush1.bf16.msra.mxu0 %v583_v42 }
 0x1f9   : > { %607 = vmatprep.subr.bf16.mxu0 %v582_v43 }
 0x1fc   : > { %608 = vmatpush1.bf16.msra.mxu0 %v581_v45 }
 0x1ff   : > { %762 = vmatmul.mubr.msk.bf16.vlgmr.msra.gmra.mxu0 %vm350_vm0, %v579_v46 }
 0x2bf   : > { %v627_v48 = vpop.f32.mrf.mxu0 }
 0x2c0   : > { %v628_v49 = vadd.f32 %v627_v48, %v588_v47 }
 0x2c1   : > { %v629_v50 = vpop.f32.mrf.mxu0 }
 0x2c2   : > { %v634_v51 = vsub.f32 0.0, %v628_v49  ;;  %v630_v52 = vadd.f32 %v629_v50, %v588_v47 }
 0x2c3   : > { %v631_v53 = vpop.f32.mrf.mxu0 }
 0x2c4   : > { %v636_v54 = vmul.f32 1.442695, %v634_v51  ;;  %v635_v55 = vsub.f32 0.0, %v630_v52 }
 0x2c5   : > { %v632_v56 = vpop.f32.mrf.mxu0 }
 0x2c6   : > { %831 = vpow2.f32 %v636_v54  ;;  %v638_v57 = vmul.f32 1.442695, %v635_v55 }
 0x2c8   : > { %833 = vpow2.f32 %v638_v57 }
 0x2d3   : > { %v832_v58 = vpop.eup %831 }
 0x2d4   : > { %v640_v59 = vadd.f32 1.0, %v832_v58 }
 0x2d5   : > { %v834_v60 = vpop.eup %833 }
 0x2d6   : > { %v641_v61 = vadd.f32 1.0, %v834_v60  ;;  %835 = vrcp.f32 %v640_v59 }
 0x2d8   : > { %837 = vrcp.f32 %v641_v61 }
 0x2e3   : > { %v836_v62 = vpop.eup %835 }
 0x2e5   : > { %v838_v63 = vpop.eup %837 }
 0x2e6   : > { %v646_v1 = vcombine.low %v836_v62, %v838_v63 }
 0x2e8   : > { %763 = vst.sshfl [vmem:[%s296_s29] sm:$0x33 pattern:$0x76325410] %v646_v1 }
 0x2e9   : > { %880 = shalt.err (!%p877_p9)
}
 0x2ea   : > { %s881_s12 = scalar_lea.hbm %s669_s16, 64  ;;  %s885_s22 = scalar_lea.hbm %s1193_s7, 256 }
 0x2eb   : > { %p882_p0 = scmp.ne.s32.totalorder %s669_s16, %s881_s12  ;;  %p886_p1 = scmp.lt.s32.totalorder %s669_s16, %s1193_s7 }
 0x2ec   : > { %p887_p3 = scmp.lt.s32.totalorder %s885_s22, %s881_s12 }
 0x2ed   : > { %p883_p2 = pnand %p882_p0, %p1203_p11 }
 0x2ee   : > { %p888_p6 = por %p887_p3, %p886_p1 }
 0x2ef   : > { %p884_p13 = pneg %p883_p2 }
 0x2f1   : > { %p889_p10 = pnand %p888_p6, %p884_p13 }
 0x2f3   : > { %892 = shalt.err (!%p889_p10)
}
 0x2f4   : > { %773 = dma.vmem_to_hbm [thread:$0]  (%p1203_p11), %s672_s21, 64, %s669_s16, %s657_s11  }
 0x2f5 PF: > { %p784_p12 = scmp.ge.s32.totalorder %s931_s27, 2  ;;  %s683_s9 = sand.u32 1, %s919_s24  }
 0x2f6   : > { %p1204_p4 = scmp.ne.s32.totalorder %s1199_s14, 0  ;;  %s684_s8 = scalar_lea.sflag [#allocation4], %s683_s9 }
 0x2f8   : > { %p780_p5 = pnand %p784_p12, %p1204_p4 }
 0x2fa   : > { %p781_p7 = pneg %p780_p5 }
 0x2fc   : > { %914 = dma.done.wait (%p781_p7), %s684_s8, 64  }
 0x2fd   : > { %916 = vsyncadd (%p781_p7), %s684_s8, 4294967232  ;;  %p20_p8 = scmp.ge.s32.totalorder %s1004_s30, 6   ;;  %s1205_s24 = smov %s923_s25 }
 0x2fe   : > { %s1206_s25 = smov %s927_s26  ;;  %s1207_s26 = smov %s1016_s10 }
 0x2ff   : > { %s1208_s27 = smov %s1004_s30  ;;  %22 = sbr.rel (!%p20_p8) target bundleno = 5 (0x5), region = 93 }
 0x304   :  { %689 = vsyncpa [#allocation3], 1 }
 0x305   :  { %691 = vsyncpa [#allocation3 + $0x1], 1 }
 0x306   :  { %692 = vsyncpa [#allocation4], 1 }
 0x307   :  { %694 = vsyncpa [#allocation4 + $0x1], 1 }

</bundles_post_ra>
